<compile_context>
chip_gen: v6e
topology: v6e:2x2x1
jax: 0.10.0
libtpu: 0.0.40
codegen_flags: <defaults>
</compile_context>

<pallas_src>
import math

import jax
import jax.numpy as jnp
from jax import lax
from jax.experimental import pallas as pl
from jax.experimental.pallas import tpu as pltpu


def _round_up(a, b):
    return ((a + b - 1) // b) * b


def _vmem_budget_bytes():
    """Generation-aware VMEM budget (~75% of physical VMEM)."""
    cap = None
    try:
        info = pltpu.get_tpu_info()
        cap = getattr(info, "vmem_capacity_bytes", None)
    except Exception:
        cap = None
    if cap is None:
        cap = 64 * 1024 * 1024  # assume the smallest generation (v7x) if unknown
    return int(cap) * 3 // 4


# ----------------------------------------------------------------------------
# Kernels
# ----------------------------------------------------------------------------
def _resident_kernel_bias(x_ref, w_ref, b_ref, o_ref):
    # x_ref: (tm, Kp) f32   w_ref: (tn, Kp) bf16   b_ref: (1, tn) f32
    acc = lax.dot_general(
        x_ref[...].astype(w_ref.dtype), w_ref[...],
        dimension_numbers=(((1,), (1,)), ((), ())),
        preferred_element_type=jnp.float32)
    o_ref[...] = (acc + b_ref[...]).astype(o_ref.dtype)


def _resident_kernel_nobias(x_ref, w_ref, o_ref):
    acc = lax.dot_general(
        x_ref[...].astype(w_ref.dtype), w_ref[...],
        dimension_numbers=(((1,), (1,)), ((), ())),
        preferred_element_type=jnp.float32)
    o_ref[...] = acc.astype(o_ref.dtype)


def _streaming_kernel_bias(x_ref, w_ref, b_ref, o_ref, acc_ref):
    k = pl.program_id(2)

    @pl.when(k == 0)
    def _init():
        acc_ref[...] = jnp.zeros_like(acc_ref)

    acc_ref[...] += lax.dot_general(
        x_ref[...].astype(w_ref.dtype), w_ref[...],
        dimension_numbers=(((1,), (1,)), ((), ())),
        preferred_element_type=jnp.float32)

    @pl.when(k == pl.num_programs(2) - 1)
    def _finalize():
        o_ref[...] = (acc_ref[...] + b_ref[...]).astype(o_ref.dtype)


def _streaming_kernel_nobias(x_ref, w_ref, o_ref, acc_ref):
    k = pl.program_id(2)

    @pl.when(k == 0)
    def _init():
        acc_ref[...] = jnp.zeros_like(acc_ref)

    acc_ref[...] += lax.dot_general(
        x_ref[...].astype(w_ref.dtype), w_ref[...],
        dimension_numbers=(((1,), (1,)), ((), ())),
        preferred_element_type=jnp.float32)

    @pl.when(k == pl.num_programs(2) - 1)
    def _finalize():
        o_ref[...] = acc_ref[...].astype(o_ref.dtype)


# ----------------------------------------------------------------------------
# Parameter preparation (one-time; hoisted out of the forward pass)
# ----------------------------------------------------------------------------
def prepare_msa_linear_params(weight, bias=None, *, compute_dtype=jnp.bfloat16):
    """Pad the constant (out_features, in_features) weight / bias to lane-
    aligned shapes and cast the weight to the MXU compute dtype ONCE."""
    N, K = weight.shape
    Np = _round_up(N, 128)
    Kp = _round_up(K, 128)
    w_p = weight
    if (Np, Kp) != (N, K):
        w_p = jnp.pad(w_p, ((0, Np - N), (0, Kp - K)))
    w_p = w_p.astype(compute_dtype)
    b_p = None
    if bias is not None:
        b_p = bias.astype(jnp.float32)
        if Np != N:
            b_p = jnp.pad(b_p, (0, Np - N))
        b_p = b_p.reshape(1, Np)
    return w_p, b_p, N, K


# ----------------------------------------------------------------------------
# Forward
# ----------------------------------------------------------------------------
def msa_linear_forward(x, params, *, out_dtype=None,
                       tile_m=512, tile_n=256, tile_k=512, weight_buffers=2):
    """y = x @ weight.T + bias with pre-prepared (padded / cast) params."""
    w_p, b_p, N, K = params
    Np, Kp = w_p.shape
    out_dtype = out_dtype or x.dtype
    has_bias = b_p is not None

    # Flatten all leading dims into the batch: bigger effective M is the single
    # biggest MXU-utilization lever and costs nothing.
    lead = x.shape[:-1]
    assert x.shape[-1] == K, "in_features mismatch"
    B = int(math.prod(lead)) if lead else 1
    x2 = x.reshape(B, K)

    in_itemsize = w_p.dtype.itemsize
    x_itemsize = x2.dtype.itemsize
    out_itemsize = jnp.dtype(out_dtype).itemsize
    budget = _vmem_budget_bytes()
    w_bytes = Np * Kp * in_itemsize

    # ---- tiling / path selection --------------------------------------------
    tm = max(8, min(_round_up(tile_m, 8), _round_up(B, 8)))

    def resident_fits(tm_, tn_):
        return (2 * w_bytes                          # weight (worst-case 2 bufs)
                + 2 * tm_ * Kp * x_itemsize          # x tiles (f32, cast in-kernel)
                + 2 * tm_ * tn_ * out_itemsize       # output tiles
                + 2 * Np * 4                         # bias
                + tm_ * tn_ * 4) <= budget           # headroom for epilogue temps

    resident = 2 * w_bytes <= budget // 2
    if resident:
        while tm > 8 and not resident_fits(tm, Np):
            tm = max(8, _round_up(tm // 2, 8))
        resident = resident_fits(tm, Np)

    if resident:
        tn = Np
        Mp = _round_up(B, tm)
        # Give v7x's second TensorCore work when there is only one M block.
        if Mp // tm == 1 and Np % 256 == 0 and resident_fits(tm, Np // 2):
            tn = Np // 2
        grid = (Mp // tm, Np // tn)
        tk = Kp
    else:
        # Streaming path: largest 128-multiple tiles that divide the padded dims.
        tn = next(t for t in range(min(_round_up(tile_n, 128), Np), 0, -128)
                  if Np % t == 0)
        tk = next(t for t in range(min(_round_up(tile_k, 128), Kp), 0, -128)
                  if Kp % t == 0)
        Mp = _round_up(B, tm)
        grid = (Mp // tm, Np // tn, Kp // tk)

    # Pad x only if actually needed; no wrapper-side dtype cast.
    if (Mp, Kp) != (B, K):
        x2 = jnp.pad(x2, ((0, Mp - B), (0, Kp - K)))

    cost = pl.CostEstimate(
        flops=int(2 * Mp * Np * Kp),
        transcendentals=0,
        bytes_accessed=int(Mp * Kp * x_itemsize + w_bytes
                           + (Np * 4 if has_bias else 0)
                           + Mp * Np * out_itemsize))

    if resident:
        in_specs = [pl.BlockSpec((tm, Kp), lambda i, j: (i, 0)),
                    pl.BlockSpec((tn, Kp), lambda i, j: (j, 0))]
        if has_bias:
            in_specs.append(pl.BlockSpec((1, tn), lambda i, j: (0, j)))
        out_specs = pl.BlockSpec((tm, tn), lambda i, j: (i, j))
        kernel = _resident_kernel_bias if has_bias else _resident_kernel_nobias
        scratch = []
        semantics = ("parallel", "parallel")
    else:
        w_spec = pl.BlockSpec((tn, tk), lambda i, j, k: (j, k))
        if weight_buffers > 2:
            # Optional deeper buffering for the DMA-latency-bound weight stream.
            w_spec = pl.BlockSpec((tn, tk), lambda i, j, k: (j, k),
                                  pipeline_mode=pl.Buffered(weight_buffers))
        in_specs = [pl.BlockSpec((tm, tk), lambda i, j, k: (i, k)), w_spec]
        if has_bias:
            in_specs.append(pl.BlockSpec((1, tn), lambda i, j, k: (0, j)))
        out_specs = pl.BlockSpec((tm, tn), lambda i, j, k: (i, j))
        kernel = _streaming_kernel_bias if has_bias else _streaming_kernel_nobias
        scratch = [pltpu.VMEM((tm, tn), jnp.float32)]
        semantics = ("parallel", "parallel", "arbitrary")

    args = (x2, w_p, b_p) if has_bias else (x2, w_p)

    y_p = pl.pallas_call(
        kernel,
        out_shape=jax.ShapeDtypeStruct((Mp, Np), out_dtype),
        grid_spec=pltpu.PrefetchScalarGridSpec(
            num_scalar_prefetch=0,
            grid=grid,
            in_specs=in_specs,
            out_specs=out_specs,
            scratch_shapes=scratch),
        compiler_params=pltpu.CompilerParams(
            dimension_semantics=semantics,
            vmem_limit_bytes=int(budget)),
        cost_estimate=cost,
    )(*args)

    y = y_p[:B, :N]
    return y.reshape(*lead, N) if lead else y.reshape(N)


def make_msa_linear_params(in_features, out_features):
    """Deterministic 'test=True' initialization from MSALinearLayer:
       weight[i, j] = -1 if (i + j) % 2 == 0 else 1
       bias[i]      = -1 if i % 2 == 0       else 1
    """
    i = jnp.arange(out_features)[:, None]
    j = jnp.arange(in_features)[None, :]
    weight = jnp.where((i + j) % 2 == 0, -1.0, 1.0).astype(jnp.float32)
    bi = jnp.arange(out_features)
    bias = jnp.where(bi % 2 == 0, -1.0, 1.0).astype(jnp.float32)
    return weight, bias


# hamilton() / set_weights_and_biases() are training-time host-side weight
# update logic, not part of the forward pass, and are intentionally omitted.

if __name__ == "__main__":
    batch, in_features, out_features = 8, 32, 16

    key = jax.random.PRNGKey(0)
    x = jax.random.normal(key, (batch, in_features), dtype=jnp.float32)

    weight, bias = make_msa_linear_params(in_features, out_features)
    params = prepare_msa_linear_params(weight, bias)   # one-time pad + bf16 cast

    y = msa_linear_forward(x, params)
    y = jax.block_until_ready(y)

    # Reference with the same bf16 quantization of x (the +/-1 sign weights are
    # exact in bf16); accumulation in f32 — matches the kernel's numerics.
    x_bf = x.astype(jnp.bfloat16).astype(jnp.float32)
    y_ref = x_bf @ weight.T + bias[None, :]
    assert y.shape == (batch, out_features)
    assert jnp.allclose(y, y_ref, atol=1e-4, rtol=1e-4), "mismatch vs reference"

    print("KERNEL_OK")
</pallas_src>

<mosaic_0001>
module attributes {stable_mosaic.version = 11 : i64} {
  func.func @_resident_kernel_bias(%arg0: i32, %arg1: i32, %arg2: memref<8x128xf32, #tpu.memory_space<vmem>>, %arg3: memref<128x128xbf16, #tpu.memory_space<vmem>>, %arg4: memref<1x128xf32, #tpu.memory_space<vmem>>, %arg5: memref<8x128xf32, #tpu.memory_space<vmem>>) attributes {dimension_semantics = [#tpu.dimension_semantics<parallel>, #tpu.dimension_semantics<parallel>], iteration_bounds = array<i64: 1, 1>, scalar_prefetch = 0 : i64, scratch_operands = 0 : i64, tpu.core_type = #tpu.core_type<tc>, window_params = [{transform_indices = @transform_0, window_bounds = array<i64: 8, 128>}, {transform_indices = @transform_1, window_bounds = array<i64: 128, 128>}, {transform_indices = @transform_2, window_bounds = array<i64: 1, 128>}, {transform_indices = @transform_3, window_bounds = array<i64: 8, 128>}]} {
    %c0 = arith.constant 0 : index
    %c0_0 = arith.constant 0 : index
    %0 = vector.load %arg2[%c0, %c0_0] : memref<8x128xf32, #tpu.memory_space<vmem>>, vector<8x128xf32>
    %1 = arith.truncf %0 : vector<8x128xf32> to vector<8x128xbf16>
    %c0_1 = arith.constant 0 : index
    %c0_2 = arith.constant 0 : index
    %2 = vector.load %arg3[%c0_1, %c0_2] : memref<128x128xbf16, #tpu.memory_space<vmem>>, vector<128x128xbf16>
    %cst = arith.constant dense<0.000000e+00> : vector<8x128xf32>
    %3 = tpu.matmul %1, %2, %cst {dimension_numbers = #tpu.dot_dimension_numbers<[1], [1], [0], [0], [0, 0, 1, 0], [], []>} : vector<8x128xbf16>, vector<128x128xbf16>, vector<8x128xf32> -> vector<8x128xf32>
    %c0_3 = arith.constant 0 : index
    %c0_4 = arith.constant 0 : index
    %4 = vector.load %arg4[%c0_3, %c0_4] : memref<1x128xf32, #tpu.memory_space<vmem>>, vector<1x128xf32>
    %5 = vector.broadcast %4 : vector<1x128xf32> to vector<8x128xf32>
    %6 = arith.addf %3, %5 : vector<8x128xf32>
    %c0_5 = arith.constant 0 : index
    %c0_6 = arith.constant 0 : index
    %7 = vector.load %arg5[%c0_5, %c0_6] : memref<8x128xf32, #tpu.memory_space<vmem>>, vector<8x128xf32>
    tpu.vector_store %arg5[%c0_5, %c0_6], %6 {strides = array<i32>} : memref<8x128xf32, #tpu.memory_space<vmem>>, vector<8x128xf32>,
    return
  }
  func.func @transform_0(%arg0: i32, %arg1: i32) -> (i32, i32) {
    %c0_i32 = arith.constant 0 : i32
    %c0_i32_0 = arith.constant 0 : i32
    return %arg0, %c0_i32 : i32, i32
  }
  func.func @transform_1(%arg0: i32, %arg1: i32) -> (i32, i32) {
    %c0_i32 = arith.constant 0 : i32
    %c0_i32_0 = arith.constant 0 : i32
    return %arg1, %c0_i32 : i32, i32
  }
  func.func @transform_2(%arg0: i32, %arg1: i32) -> (i32, i32) {
    %c0_i32 = arith.constant 0 : i32
    %c0_i32_0 = arith.constant 0 : i32
    return %c0_i32, %arg1 : i32, i32
  }
  func.func @transform_3(%arg0: i32, %arg1: i32) -> (i32, i32) {
    %c0_i32 = arith.constant 0 : i32
    return %arg0, %arg1 : i32, i32
  }
}

</mosaic_0001>

<bundles_post_ra>
// kernel: tpu_custom_call.1
= control target key start
LH: loop header
LB: loop body
LE: loop exit
PB: predicated region body
PF: predicated region fallthrough
CT: control target
= control target key end

     0   :  { %8 = vsyncpa [#allocation3], 0  ;;  %s330_s0 = inlined_call_operand.hbm [shape: f32[8,128], index: 0, kind: input, shape index: {}]   ;;  %s331_s1 = inlined_call_operand.hbm [shape: bf16[128,128], index: 1, kind: input, shape index: {}]   ;;  %s332_s2 = inlined_call_operand.vmem [shape: f32[1,128], index: 2, kind: input, shape index: {}]   ;;  %s333_s3 = inlined_call_operand.hbm [shape: f32[8,128], index: 3, kind: output, shape index: {}]  }
   0x1   :  { %9 = vsyncpa [#allocation6], 0 }
   0x2   :  { %10 = vsyncpa [#allocation4], 0  ;;  %s291_s12 = smov [#allocation2]   ;;  %s292_s14 = smov [#allocation5]  }
   0x3   :  { %s17_s13 = sshll.u32 %s291_s12, 4  ;;  %s26_s15 = sshll.u32 %s292_s14, 4  ;;  %s18_s13 = int_to_ptr.vmem [resolvable:$true] %s17_s13  ;;  %s27_s15 = int_to_ptr.vmem [resolvable:$true] %s26_s15 }
   0x4   :  { %s233_s16 = scalar_lea.vmem %s18_s13, 128  ;;  %p238_p1 = scmp.lt.s32.totalorder %s18_s13, %s18_s13 }
   0x5   :  { %p234_p0 = scmp.ne.s32.totalorder %s18_s13, %s233_s16  ;;  %p239_p2 = scmp.lt.s32.totalorder %s233_s16, %s233_s16 }
   0x7   :  { %p240_p3 = por %p239_p2, %p238_p1 }
   0x9   :  { %p241_p4 = pnand %p240_p3, %p234_p0 }
   0xb   :  { %244 = shalt.err (!%p241_p4)
}
   0xc   :  { %20 = dma.hbm_to_vmem [thread:$0]  %s330_s0, 128, %s18_s13, [#allocation3]  }
   0xd   :  { %s253_s19 = scalar_lea.vmem %s27_s15, 1024  ;;  %p258_p6 = scmp.lt.s32.totalorder %s27_s15, %s27_s15 }
   0xe   :  { %p254_p5 = scmp.ne.s32.totalorder %s27_s15, %s253_s19  ;;  %p259_p7 = scmp.lt.s32.totalorder %s253_s19, %s253_s19 }
  0x10   :  { %p260_p8 = por %p259_p7, %p258_p6 }
  0x12   :  { %p261_p9 = pnand %p260_p8, %p254_p5 }
  0x14   :  { %264 = shalt.err (!%p261_p9)
}
  0x15   :  { %s293_s20 = smov 64   ;;  %s294_s21 = smov 4  }
  0x16   :  { %32 = dma.hbm_to_vmem [thread:$0]  %s331_s1, 1024, %s27_s15, [#allocation6], %s293_s20, %s293_s20, %s294_s21  }
  0x17   :  { %285 = dma.done.wait [#allocation3], 128  }
  0x18   :  { %286 = vsyncadd [#allocation3], 4294967168 }
  0x19   :  { %287 = dma.done.wait [#allocation6], 1024  }
  0x1a   :  { %288 = vsyncadd [#allocation6], 4294966272  ;;  %v295_v0 = vmov 0.0   ;;  %vm296_vm0 = vmmov 0   ;;  %v217_v1 = vld [vmem:[#allocation5 + $0x38] sm:$0xff]   ;;  %v218_v2 = vld [vmem:[#allocation5 + $0x30] sm:$0xff]  }
  0x1b   :  { %190 = vmatprep.subr.bf16.mxu0 %v295_v0  ;;  %206 = vmatprep.mubr.msk.bf16.mxu0 %vm296_vm0, %v295_v0  ;;  %v219_v3 = vld [vmem:[#allocation5 + $0x28] sm:$0xff]   ;;  %v220_v4 = vld [vmem:[#allocation5 + $0x20] sm:$0xff]   ;;  %v221_v5 = vld [vmem:[#allocation5 + $0x18] sm:$0xff]   ;;  %s297_s24 = smov [#allocation7]  }
  0x1c   :  { %191 = vmatpush3.bf16.xpose.msra.mxu0 %v217_v1  ;;  %v222_v6 = vld [vmem:[#allocation5 + $0x10] sm:$0xff]   ;;  %v223_v7 = vld [vmem:[#allocation5 + $0x8] sm:$0xff]   ;;  %v224_v8 = vld [vmem:[#allocation5] sm:$0xff]   ;;  %s162_s25 = sshll.u32 %s297_s24, 4  ;;  %s163_s25 = int_to_ptr.vmem [resolvable:$true] %s162_s25 }
  0x1d   :  { %192 = vmatprep.subr.bf16.mxu0 %v295_v0  ;;  %v42_v9 = vld [vmem:[#allocation2] sm:$0xff]  ;;  %s265_s26 = scalar_lea.vmem %s163_s25, 128  ;;  %p270_p11 = scmp.lt.s32.totalorder %s163_s25, %s163_s25 }
  0x1e   :  { %v43_v10 = vpack.c.bf16 %v42_v9, %v42_v9  ;;  %v172_v11 = vld [vmem:[%s332_s2] ss:$0 sm:$0xff]  ;;  %p266_p10 = scmp.ne.s32.totalorder %s163_s25, %s265_s26  ;;  %p271_p12 = scmp.lt.s32.totalorder %s265_s26, %s265_s26 }
  0x20   :  { %p272_p13 = por %p271_p12, %p270_p11 }
  0x22   :  { %p273_p0 = pnand %p272_p13, %p266_p10 }
  0x24   :  { %193 = vmatpush3.bf16.xpose.msra.mxu0 %v218_v2 }
  0x25   :  { %194 = vmatprep.subr.bf16.mxu0 %v295_v0 }
  0x2c   :  { %195 = vmatpush3.bf16.xpose.msra.mxu0 %v219_v3 }
  0x2d   :  { %196 = vmatprep.subr.bf16.mxu0 %v295_v0 }
  0x34   :  { %197 = vmatpush3.bf16.xpose.msra.mxu0 %v220_v4 }
  0x35   :  { %198 = vmatprep.subr.bf16.mxu0 %v295_v0 }
  0x3c   :  { %199 = vmatpush3.bf16.xpose.msra.mxu0 %v221_v5 }
  0x3d   :  { %200 = vmatprep.subr.bf16.mxu0 %v295_v0 }
  0x44   :  { %201 = vmatpush3.bf16.xpose.msra.mxu0 %v222_v6 }
  0x45   :  { %202 = vmatprep.subr.bf16.mxu0 %v295_v0 }
  0x4c   :  { %203 = vmatpush3.bf16.xpose.msra.mxu0 %v223_v7 }
  0x4d   :  { %204 = vmatprep.subr.bf16.mxu0 %v295_v0 }
  0x54   :  { %205 = vmatpush3.bf16.xpose.msra.mxu0 %v224_v8 }
  0x5b   :  { %207 = vmatmul.mubr.bf16.vlgmr.msra.gmra.mxu0 %v43_v10 }
 0x11b   :  { %v149_v12 = vpop.f32.mrf.mxu0 }
 0x11c   :  { %v150_v13 = vadd.f32 %v172_v11, %v149_v12 }
 0x11d   :  { %v208_v14 = vpop.f32.mrf.mxu0 }
 0x11e   :  { %155 = vst [vmem:[#allocation7] sm:$0xff] %v150_v13 }
 0x11f   :  { %v152_v15 = vpop.f32.mrf.mxu0 }
 0x120   :  { %276 = shalt.err (!%p273_p0)
}
 0x121   :  { %165 = dma.vmem_to_hbm [thread:$0]  %s163_s25, 128, %s333_s3, [#allocation4]   ;;  %v209_v16 = vpop.f32.mrf.mxu0 }
 0x122   :  { %289 = dma.done.wait [#allocation4], 128  }
 0x123   :  { %290 = vsyncadd [#allocation4], 4294967168 }
 0x124   :  { %169 = vsyncpa [#allocation3], 1 }
 0x125   :  { %170 = vsyncpa [#allocation6], 1 }
 0x126   :  { %171 = vsyncpa [#allocation4], 1 }

</bundles_post_ra>
